<compile_context>
chip_gen: v7x
topology: tpu7x:2x2x1
jax: 0.10.0
libtpu: 0.0.40
codegen_flags: <defaults>
</compile_context>

<pallas_src>
import jax
import jax.numpy as jnp
from jax.experimental import pallas as pl
from jax.experimental.pallas import tpu as pltpu

_LANE = 128     # pad OUT to the 128-lane vreg width (dense, unmasked stores)
_TM_MAX = 512   # max row tile (512x1024 bf16 x-tile = 1 MiB, fits easily)
_TK = 1024      # K (in_features) streaming tile; multiple of 128


def _round_up(x, m):
    return ((x + m - 1) // m) * m


def _cdiv(a, b):
    return -(-a // b)


# ----------------------------------------------------------------------------
# Pallas kernel: K-streamed matmul + bias with f32 VMEM accumulator.
#   x_ref: (TM, TK) bf16   w_ref: (TK, OUT_PAD) bf16   b_ref: (1, OUT_PAD) f32
#   o_ref: (TM, OUT_PAD) f32   acc_ref: (TM, OUT_PAD) f32 scratch
# Grid = (row_blocks, k_blocks); K axis last and "arbitrary".
# ----------------------------------------------------------------------------
def _linear_kernel(x_ref, w_ref, b_ref, o_ref, acc_ref):
    k = pl.program_id(1)

    @pl.when(k == 0)
    def _():
        acc_ref[...] = jnp.zeros_like(acc_ref)

    acc_ref[...] += jnp.dot(x_ref[...], w_ref[...],
                            preferred_element_type=jnp.float32)

    @pl.when(k == pl.num_programs(1) - 1)
    def _():
        o_ref[...] = (acc_ref[...] + b_ref[...]).astype(o_ref.dtype)


@jax.jit
def pallas_linear_padded(x, w_pad, b_pad):
    """Returns the lane-padded result x.reshape(B,-1) @ w_pad + b_pad : (B, OUT_PAD) f32."""
    B = x.shape[0]
    x_flat = x.reshape(B, -1).astype(w_pad.dtype)   # bf16 cast fused with flatten
    IN = x_flat.shape[1]
    IN_PAD, OUT_PAD = w_pad.shape

    # Row tile: multiple of 8 sublanes, capped at _TM_MAX.  For batches big
    # enough to split we guarantee >= 2 row blocks so v7x's 2 TensorCores both
    # get work; for tiny batches use a single full block (no OOB rows at all).
    if B <= 16:
        tm = B
    else:
        tm = min(_TM_MAX, _round_up(_cdiv(B, 2), 8))
    n_row = _cdiv(B, tm)

    # K tile: full IN when small, else stream in _TK chunks (IN_PAD is a
    # multiple of _TK by construction in TinyClassifier.__init__).
    tk = IN_PAD if IN_PAD <= _TK else _TK
    n_k = IN_PAD // tk

    return pl.pallas_call(
        _linear_kernel,
        out_shape=jax.ShapeDtypeStruct((B, OUT_PAD), jnp.float32),
        grid_spec=pltpu.PrefetchScalarGridSpec(
            num_scalar_prefetch=0,
            grid=(n_row, n_k),
            in_specs=[
                pl.BlockSpec((tm, tk), lambda i, k: (i, k)),        # x tile
                pl.BlockSpec((tk, OUT_PAD), lambda i, k: (k, 0)),   # W tile (streamed)
                pl.BlockSpec((1, OUT_PAD), lambda i, k: (0, 0)),    # bias (constant)
            ],
            out_specs=pl.BlockSpec((tm, OUT_PAD), lambda i, k: (i, 0)),
            scratch_shapes=[pltpu.VMEM((tm, OUT_PAD), jnp.float32)],
        ),
        compiler_params=pltpu.CompilerParams(
            dimension_semantics=("parallel", "arbitrary")),
    )(x_flat, w_pad, b_pad)


# ----------------------------------------------------------------------------
# The wrapped model: deterministic tiny classifier whose forward runs the
# Pallas kernel.  Weights are stored in their kernel-ready padded bf16 layout.
# ----------------------------------------------------------------------------
class TinyClassifier:
    def __init__(self, in_features: int, num_classes: int, key):
        kw, kb = jax.random.split(key)
        self.num_classes = num_classes
        w = (jax.random.normal(kw, (in_features, num_classes), jnp.float32)
             * (1.0 / jnp.sqrt(in_features)))
        b = jax.random.normal(kb, (num_classes,), jnp.float32) * 0.01

        out_pad = _round_up(max(num_classes, _LANE), _LANE)
        # Zero-pad IN to a multiple of _TK when streaming K, so ragged x
        # K-blocks multiply with zero weight rows (exact zero contribution).
        in_pad = _round_up(in_features, _TK) if in_features > _TK else in_features

        w_full = jnp.zeros((in_pad, out_pad), jnp.float32)
        w_full = w_full.at[:in_features, :num_classes].set(w)
        # bf16 weights: half the HBM bytes + native MXU path; f32 accumulate in-kernel.
        self.w_pad = w_full.astype(jnp.bfloat16)
        self.b_pad = jnp.zeros((1, out_pad), jnp.float32).at[0, :num_classes].set(b)

        # un-padded f32 copies kept only for the reference check in __main__
        self.w = w
        self.b = b

    def forward(self, x):
        out_pad = pallas_linear_padded(x, self.w_pad, self.b_pad)
        # lane-padding sliced off only here, at the consumption point
        return out_pad[:, :self.num_classes]

    # extra method to demonstrate Wrap's `func=` dispatch path
    def features(self, x):
        return x.reshape(x.shape[0], -1)


# ----------------------------------------------------------------------------
# Wrap: exact reproduction of the PyTorch module's forward semantics.
# ----------------------------------------------------------------------------
class Wrap:
    def __init__(self, model):
        self.model = model

    def forward(self, *args, func="forward", **kwargs):
        return getattr(self.model, func)(*args, **kwargs)

    __call__ = forward


if __name__ == "__main__":
    key = jax.random.PRNGKey(0)
    kx, kp, kx2, kp2, kx3 = jax.random.split(key, 5)

    def ref_forward(m, xx):
        # reference with bf16-rounded inputs (kernel casts x/W to bf16) and
        # f32 accumulation, matching the kernel's numerics.
        xf = xx.reshape(xx.shape[0], -1).astype(jnp.bfloat16).astype(jnp.float32)
        wf = m.w.astype(jnp.bfloat16).astype(jnp.float32)
        return xf @ wf + m.b

    # --- primary small example: B=2, C=4, H=W=16 -> in_features=1024 -------
    B, C, H, W = 2, 4, 16, 16
    num_classes = 32
    x = jax.random.normal(kx, (B, C, H, W), jnp.float32)
    model = TinyClassifier(C * H * W, num_classes, kp)
    wrapped = Wrap(model)

    out = jax.block_until_ready(wrapped(x))      # default dispatch: func='forward'
    assert out.shape == (B, num_classes)
    assert jnp.allclose(out, ref_forward(model, x), atol=5e-4, rtol=5e-4)

    # alternate dispatch path via func=, matching getattr semantics
    feats = jax.block_until_ready(wrapped(x, func="features"))
    assert feats.shape == (B, C * H * W)

    # --- batched path: non-multiple batch -> ragged last row block (masked) -
    B2 = 150
    x_big = jax.random.normal(kx2, (B2, C, H, W), jnp.float32)
    out_big = jax.block_until_ready(wrapped(x_big))
    assert out_big.shape == (B2, num_classes)
    assert jnp.allclose(out_big, ref_forward(model, x_big), atol=5e-4, rtol=5e-4)

    # --- larger in_features -> multiple K tiles (streamed W + f32 accumulator)
    B3, C3, H3, W3 = 32, 4, 32, 32        # in_features = 4096 -> 4 K-steps
    model_big = TinyClassifier(C3 * H3 * W3, num_classes, kp2)
    wrapped_big = Wrap(model_big)
    x3 = jax.random.normal(kx3, (B3, C3, H3, W3), jnp.float32)
    out3 = jax.block_until_ready(wrapped_big(x3))
    assert out3.shape == (B3, num_classes)
    assert jnp.allclose(out3, ref_forward(model_big, x3), atol=5e-4, rtol=5e-4)

    print("KERNEL_OK")
</pallas_src>

<mosaic_0001>
module attributes {stable_mosaic.version = 11 : i64} {
  func.func @_linear_kernel(%arg0: i32, %arg1: i32, %arg2: memref<2x1024xbf16, #tpu.memory_space<vmem>>, %arg3: memref<1024x128xbf16, #tpu.memory_space<vmem>>, %arg4: memref<1x128xf32, #tpu.memory_space<vmem>>, %arg5: memref<2x128xf32, #tpu.memory_space<vmem>>, %arg6: memref<2x128xf32, #tpu.memory_space<vmem>>) attributes {dimension_semantics = [#tpu.dimension_semantics<parallel>, #tpu.dimension_semantics<arbitrary>], iteration_bounds = array<i64: 1, 1>, scalar_prefetch = 0 : i64, scratch_operands = 1 : i64, tpu.core_type = #tpu.core_type<tc>, window_params = [{transform_indices = @transform_0, window_bounds = array<i64: 2, 1024>}, {transform_indices = @transform_1, window_bounds = array<i64: 1024, 128>}, {pipeline_mode = #tpu.pipeline_mode<synchronous>, transform_indices = @transform_2, window_bounds = array<i64: 1, 128>}, {transform_indices = @transform_3, window_bounds = array<i64: 2, 128>}]} {
    %c0_i32 = arith.constant 0 : i32
    %0 = arith.cmpi eq, %arg1, %c0_i32 : i32
    %1 = arith.extui %0 : i1 to i32
    %c0_i32_0 = arith.constant 0 : i32
    %2 = arith.cmpi ne, %1, %c0_i32_0 : i32
    scf.if %2 {
      %cst_10 = arith.constant 0.000000e+00 : f32
      %12 = vector.broadcast %cst_10 : f32 to vector<2x128xf32>
      %c0_11 = arith.constant 0 : index
      %c0_12 = arith.constant 0 : index
      %13 = vector.load %arg6[%c0_11, %c0_12] : memref<2x128xf32, #tpu.memory_space<vmem>>, vector<2x128xf32>
      tpu.vector_store %arg6[%c0_11, %c0_12], %12 {strides = array<i32>} : memref<2x128xf32, #tpu.memory_space<vmem>>, vector<2x128xf32>,
    } else {
    }
    %c0 = arith.constant 0 : index
    %c0_1 = arith.constant 0 : index
    %3 = vector.load %arg6[%c0, %c0_1] : memref<2x128xf32, #tpu.memory_space<vmem>>, vector<2x128xf32>
    %c0_2 = arith.constant 0 : index
    %c0_3 = arith.constant 0 : index
    %4 = vector.load %arg2[%c0_2, %c0_3] : memref<2x1024xbf16, #tpu.memory_space<vmem>>, vector<2x1024xbf16>
    %c0_4 = arith.constant 0 : index
    %c0_5 = arith.constant 0 : index
    %5 = vector.load %arg3[%c0_4, %c0_5] : memref<1024x128xbf16, #tpu.memory_space<vmem>>, vector<1024x128xbf16>
    %cst = arith.constant dense<0.000000e+00> : vector<2x128xf32>
    %6 = tpu.matmul %4, %5, %cst {dimension_numbers = #tpu.dot_dimension_numbers<[1], [0], [0], [1], [0, 0, 1, 1], [], []>} : vector<2x1024xbf16>, vector<1024x128xbf16>, vector<2x128xf32> -> vector<2x128xf32>
    %7 = arith.addf %3, %6 : vector<2x128xf32>
    %c0_6 = arith.constant 0 : index
    %c0_7 = arith.constant 0 : index
    %8 = vector.load %arg6[%c0_6, %c0_7] : memref<2x128xf32, #tpu.memory_space<vmem>>, vector<2x128xf32>
    tpu.vector_store %arg6[%c0_6, %c0_7], %7 {strides = array<i32>} : memref<2x128xf32, #tpu.memory_space<vmem>>, vector<2x128xf32>,
    %c0_i32_8 = arith.constant 0 : i32
    %9 = arith.cmpi eq, %arg1, %c0_i32_8 : i32
    %10 = arith.extui %9 : i1 to i32
    %c0_i32_9 = arith.constant 0 : i32
    %11 = arith.cmpi ne, %10, %c0_i32_9 : i32
    scf.if %11 {
      %c0_10 = arith.constant 0 : index
      %c0_11 = arith.constant 0 : index
      %12 = vector.load %arg6[%c0_10, %c0_11] : memref<2x128xf32, #tpu.memory_space<vmem>>, vector<2x128xf32>
      %c0_12 = arith.constant 0 : index
      %c0_13 = arith.constant 0 : index
      %13 = vector.load %arg4[%c0_12, %c0_13] : memref<1x128xf32, #tpu.memory_space<vmem>>, vector<1x128xf32>
      %14 = vector.broadcast %13 : vector<1x128xf32> to vector<2x128xf32>
      %15 = arith.addf %12, %14 : vector<2x128xf32>
      %c0_14 = arith.constant 0 : index
      %c0_15 = arith.constant 0 : index
      %16 = vector.load %arg5[%c0_14, %c0_15] : memref<2x128xf32, #tpu.memory_space<vmem>>, vector<2x128xf32>
      tpu.vector_store %arg5[%c0_14, %c0_15], %15 {strides = array<i32>} : memref<2x128xf32, #tpu.memory_space<vmem>>, vector<2x128xf32>,
    } else {
    }
    return
  }
  func.func @transform_0(%arg0: i32, %arg1: i32) -> (i32, i32) {
    %c0_i32 = arith.constant 0 : i32
    return %arg0, %arg1 : i32, i32
  }
  func.func @transform_1(%arg0: i32, %arg1: i32) -> (i32, i32) {
    %c0_i32 = arith.constant 0 : i32
    %c0_i32_0 = arith.constant 0 : i32
    return %arg1, %c0_i32 : i32, i32
  }
  func.func @transform_2(%arg0: i32, %arg1: i32) -> (i32, i32) {
    %c0_i32 = arith.constant 0 : i32
    %c0_i32_0 = arith.constant 0 : i32
    %c0_i32_1 = arith.constant 0 : i32
    return %c0_i32, %c0_i32_0 : i32, i32
  }
  func.func @transform_3(%arg0: i32, %arg1: i32) -> (i32, i32) {
    %c0_i32 = arith.constant 0 : i32
    %c0_i32_0 = arith.constant 0 : i32
    return %arg0, %c0_i32 : i32, i32
  }
}

</mosaic_0001>

<bundles_post_ra>
// kernel: pallas_linear_padded.1
= control target key start
LH: loop header
LB: loop body
LE: loop exit
PB: predicated region body
PF: predicated region fallthrough
CT: control target
= control target key end

     0   :  { %8 = vsyncpa [#allocation4], 0  ;;  %s1138_s0 = inlined_call_operand.vmem [shape: bf16[2,1024], index: 0, kind: input, shape index: {}]   ;;  %s1139_s1 = inlined_call_operand.hbm [shape: bf16[1024,128], index: 1, kind: input, shape index: {}]   ;;  %s1140_s2 = inlined_call_operand.vmem [shape: f32[1,128], index: 2, kind: input, shape index: {}]   ;;  %s1141_s3 = inlined_call_operand.hbm [shape: f32[2,128], index: 3, kind: output, shape index: {}]  }
   0x1   :  { %9 = vsyncpa [#allocation5], 0  ;;  %s1069_s12 = smov [#allocation3]   ;;  %s1021_s16 = scalar_lea.hbm %s1139_s1, 8192 }
   0x2   :  { %s17_s13 = sshll.u32 %s1069_s12, 4  ;;  %p1022_p0 = scmp.ne.s32.totalorder %s1139_s1, %s1021_s16  ;;  %s18_s13 = int_to_ptr.vmem [resolvable:$true] %s17_s13 }
   0x3   :  { %p1025_p1 = scmp.lt.u32.totalorder %s1021_s16, %s1139_s1 }
   0x5   :  { %p1027_p2 = pnand %p1025_p1, %p1022_p0 }
   0x7   :  { %1030 = shalt.err (!%p1027_p2)
}
   0x8   :  { %s1031_s21 = scalar_lea.vmem %s18_s13, 8192  ;;  %p1036_p4 = scmp.lt.s32.totalorder %s18_s13, %s18_s13 }
   0x9   :  { %p1032_p3 = scmp.ne.s32.totalorder %s18_s13, %s1031_s21  ;;  %p1037_p5 = scmp.lt.s32.totalorder %s1031_s21, %s1031_s21 }
   0xb   :  { %p1038_p6 = por %p1037_p5, %p1036_p4 }
   0xd   :  { %p1039_p7 = pnand %p1038_p6, %p1032_p3 }
   0xf   :  { %1042 = shalt.err (!%p1039_p7)
}
  0x10   :  { %s1070_s22 = smov 64   ;;  %s1071_s23 = smov 4  }
  0x11   :  { %23 = dma.hbm_to_vmem [thread:$0]  %s1139_s1, 8192, %s18_s13, [#allocation4], %s1070_s22, %s1070_s22, %s1071_s23  }
  0x12   :  { %1065 = dma.done.wait [#allocation4], 8192  }
  0x13   :  { %1066 = vsyncadd [#allocation4], 4294959104  ;;  %v956_v0 = vld [vmem:[#allocation3 + $0x40] sm:$0xff]   ;;  %v960_v4 = vld [vmem:[#allocation3 + $0x48] sm:$0xff]   ;;  %v1072_v22 = vmov 1966171168   ;;  %v170_v24 = vlaneseq }
  0x14   :  { %v957_v1 = vld [vmem:[#allocation3 + $0xc0] sm:$0xff]   ;;  %862 = vmatprep.subr.bf16.mxu0 %v956_v0  ;;  %v961_v5 = vld [vmem:[#allocation3 + $0xc8] sm:$0xff]   ;;  %v964_v8 = vld [vmem:[#allocation3 + $0x50] sm:$0xff]   ;;  %v168_v23 = vunpack.c.l.s4 %v1072_v22  ;;  %s1074_s28 = smov [#allocation6]  }
  0x15   :  { %v958_v2 = vld [vmem:[#allocation3] sm:$0xff]   ;;  %884 = vmatprep.subr.bf16.mxu1 %v957_v1  ;;  %v962_v6 = vld [vmem:[#allocation3 + $0x8] sm:$0xff]   ;;  %v965_v9 = vld [vmem:[#allocation3 + $0xd0] sm:$0xff]   ;;  %v171_v30 = vshrl.u32 %v170_v24, 7  ;;  %s788_s29 = sshll.u32 %s1074_s28, 4  ;;  %s789_s29 = int_to_ptr.vmem [resolvable:$true] %s788_s29 }
  0x16   :  { %v959_v3 = vld [vmem:[#allocation3 + $0x80] sm:$0xff]   ;;  %863 = vmatpush3.bf16.msra.mxu0 %v958_v2  ;;  %v963_v7 = vld [vmem:[#allocation3 + $0x88] sm:$0xff]   ;;  %v966_v10 = vld [vmem:[#allocation3 + $0x10] sm:$0xff]   ;;  %v169_v29 = vunpack.c.0.s8 %v168_v23  ;;  %s1043_s30 = scalar_lea.vmem %s789_s29, 32  ;;  %p1048_p9 = scmp.lt.s32.totalorder %s789_s29, %s789_s29 }
  0x17   :  { %885 = vmatpush3.bf16.msra.mxu1 %v959_v3  ;;  %864 = vmatprep.subr.bf16.mxu0 %v960_v4  ;;  %v967_v11 = vld [vmem:[#allocation3 + $0x90] sm:$0xff]   ;;  %v968_v12 = vld [vmem:[#allocation3 + $0x58] sm:$0xff]   ;;  %v972_v16 = vld [vmem:[#allocation3 + $0x60] sm:$0xff]   ;;  %p1044_p8 = scmp.ne.s32.totalorder %s789_s29, %s1043_s30  ;;  %p1049_p10 = scmp.lt.s32.totalorder %s1043_s30, %s1043_s30 }
  0x18   :  { %886 = vmatprep.subr.bf16.mxu1 %v961_v5  ;;  %v969_v13 = vld [vmem:[#allocation3 + $0xd8] sm:$0xff]   ;;  %v973_v17 = vld [vmem:[#allocation3 + $0xe0] sm:$0xff]   ;;  %v976_v20 = vld [vmem:[#allocation3 + $0x68] sm:$0xff]   ;;  %v1107_v35 = vsub.s32 %v169_v29, %v171_v30 }
  0x19   :  { %v970_v14 = vld [vmem:[#allocation3 + $0x18] sm:$0xff]   ;;  %v974_v18 = vld [vmem:[#allocation3 + $0x20] sm:$0xff]   ;;  %v977_v21 = vld [vmem:[#allocation3 + $0xe8] sm:$0xff]   ;;  %p1050_p11 = por %p1049_p10, %p1048_p9 }
  0x1a   :  { %865 = vmatpush3.bf16.msra.mxu0 %v962_v6  ;;  %v971_v15 = vld [vmem:[#allocation3 + $0x98] sm:$0xff]   ;;  %v975_v19 = vld [vmem:[#allocation3 + $0xa0] sm:$0xff]   ;;  %v978_v25 = vld [vmem:[#allocation3 + $0x28] sm:$0xff]  }
  0x1b   :  { %887 = vmatpush3.bf16.msra.mxu1 %v963_v7  ;;  %866 = vmatprep.subr.bf16.mxu0 %v964_v8  ;;  %v979_v26 = vld [vmem:[#allocation3 + $0xa8] sm:$0xff]   ;;  %v980_v27 = vld [vmem:[#allocation3 + $0x70] sm:$0xff]   ;;  %v984_v33 = vld [vmem:[#allocation3 + $0x78] sm:$0xff]   ;;  %p1051_p12 = pnand %p1050_p11, %p1044_p8 }
  0x1c   :  { %888 = vmatprep.subr.bf16.mxu1 %v965_v9  ;;  %v981_v28 = vld [vmem:[#allocation3 + $0xf0] sm:$0xff]   ;;  %v985_v34 = vld [vmem:[#allocation3 + $0xf8] sm:$0xff]   ;;  %v989_v41 = vld [vmem:[#allocation3 + $0x140] sm:$0xff]  }
  0x1d   :  { %v982_v31 = vld [vmem:[#allocation3 + $0x30] sm:$0xff]   ;;  %v986_v36 = vld [vmem:[#allocation3 + $0x38] sm:$0xff]   ;;  %v990_v42 = vld [vmem:[#allocation3 + $0x1c0] sm:$0xff]  }
  0x1e   :  { %867 = vmatpush3.bf16.msra.mxu0 %v966_v10  ;;  %v983_v32 = vld [vmem:[#allocation3 + $0xb0] sm:$0xff]   ;;  %v987_v37 = vld [vmem:[#allocation3 + $0xb8] sm:$0xff]   ;;  %v991_v47 = vld [vmem:[#allocation3 + $0x100] sm:$0xff]  }
  0x1f   :  { %889 = vmatpush3.bf16.msra.mxu1 %v967_v11  ;;  %868 = vmatprep.subr.bf16.mxu0 %v968_v12  ;;  %v36_v38 = vld [vmem:[%s1138_s0] sm:$0xff]  ;;  %v993_v50 = vld [vmem:[#allocation3 + $0x148] sm:$0xff]   ;;  %v997_v57 = vld [vmem:[#allocation3 + $0x150] sm:$0xff]  }
  0x20   :  { %890 = vmatprep.subr.bf16.mxu1 %v969_v13  ;;  %v166_v39 = vcombine.high %v36_v38, %v36_v38  ;;  %v173_v40 = vrot.slane %v36_v38, %v1107_v35  ;;  %v992_v52 = vld [vmem:[#allocation3 + $0x180] sm:$0xff]   ;;  %v994_v54 = vld [vmem:[#allocation3 + $0x1c8] sm:$0xff]   ;;  %v998_v59 = vld [vmem:[#allocation3 + $0x1d0] sm:$0xff]  }
  0x21   :  { %v995_v55 = vld [vmem:[#allocation3 + $0x108] sm:$0xff]   ;;  %v999_v60 = vld [vmem:[#allocation3 + $0x110] sm:$0xff]   ;;  %v1001_v61 = vld [vmem:[#allocation3 + $0x158] sm:$0xff]  }
  0x22   :  { %869 = vmatpush3.bf16.msra.mxu0 %v970_v14  ;;  %v181_v43 = vcombine.high %v173_v40, %v173_v40  ;;  %v189_v44 = vrot.slane %v173_v40, %v1107_v35  ;;  %v1115_v45 = vrot.slane %v166_v39, %v1107_v35  ;;  %v996_v58 = vld [vmem:[#allocation3 + $0x188] sm:$0xff]   ;;  %v1000_v62 = vld [vmem:[#allocation3 + $0x190] sm:$0xff]   ;;  %v1002_v63 = vld [vmem:[#allocation3 + $0x1d8] sm:$0xff]  }
  0x23   :  { %891 = vmatpush3.bf16.msra.mxu1 %v971_v15  ;;  %870 = vmatprep.subr.bf16.mxu0 %v972_v16  ;;  %v1003_v0 = vld [vmem:[#allocation3 + $0x118] sm:$0xff]   ;;  %v1005_v1 = vld [vmem:[#allocation3 + $0x160] sm:$0xff]   ;;  %v1009_v5 = vld [vmem:[#allocation3 + $0x168] sm:$0xff]  }
  0x24   :  { %892 = vmatprep.subr.bf16.mxu1 %v973_v17  ;;  %v203_v46 = vrot.slane %v181_v43, %v1107_v35  ;;  %v182_v48 = vcombine.high %v1115_v45, %v1115_v45  ;;  %v211_v49 = vcombine.high %v189_v44, %v189_v44  ;;  %v1004_v2 = vld [vmem:[#allocation3 + $0x198] sm:$0xff]   ;;  %v1006_v3 = vld [vmem:[#allocation3 + $0x1e0] sm:$0xff]   ;;  %v1010_v7 = vld [vmem:[#allocation3 + $0x1e8] sm:$0xff]   ;;  %v196_v17 = vrot.slane %v1115_v45, %v1107_v35 }
  0x25   :  { %v1007_v4 = vld [vmem:[#allocation3 + $0x120] sm:$0xff]   ;;  %v1011_v8 = vld [vmem:[#allocation3 + $0x128] sm:$0xff]   ;;  %v1013_v9 = vld [vmem:[#allocation3 + $0x170] sm:$0xff]  }
  0x26   :  { %871 = vmatpush3.bf16.msra.mxu0 %v974_v18  ;;  %639 = vmatprep.mubr.bf16.mxu0 %v203_v46  ;;  %v213_v51 = vcombine.high %v203_v46, %v203_v46  ;;  %v210_v53 = vrot.slane %v182_v48, %v1107_v35  ;;  %v1008_v6 = vld [vmem:[#allocation3 + $0x1a0] sm:$0xff]   ;;  %v1012_v10 = vld [vmem:[#allocation3 + $0x1a8] sm:$0xff]   ;;  %v1014_v11 = vld [vmem:[#allocation3 + $0x1f0] sm:$0xff]  }
  0x27   :  { %893 = vmatpush3.bf16.msra.mxu1 %v975_v19  ;;  %872 = vmatprep.subr.bf16.mxu0 %v976_v20  ;;  %v1015_v12 = vld [vmem:[#allocation3 + $0x130] sm:$0xff]   ;;  %v1017_v13 = vld [vmem:[#allocation3 + $0x178] sm:$0xff]   ;;  %v212_v19 = vcombine.high %v196_v17, %v196_v17  ;;  %v1073_v20 = vmov 0.0  }
  0x28   :  { %894 = vmatprep.subr.bf16.mxu1 %v977_v21  ;;  %679 = vmatprep.mubr.bf16.mxu1 %v213_v51  ;;  %v214_v56 = vcombine.high %v210_v53, %v210_v53  ;;  %v1016_v14 = vld [vmem:[#allocation3 + $0x1b0] sm:$0xff]   ;;  %v1018_v15 = vld [vmem:[#allocation3 + $0x1f8] sm:$0xff]   ;;  %34 = vst [vmem:[#allocation2] sm:$0x3] %v1073_v20 }
  0x29   :  { %v1019_v16 = vld [vmem:[#allocation3 + $0x138] sm:$0xff]  }
  0x2a   :  { %873 = vmatpush3.bf16.msra.mxu0 %v978_v25  ;;  %v1020_v18 = vld [vmem:[#allocation3 + $0x1b8] sm:$0xff]  }
  0x2b   :  { %895 = vmatpush3.bf16.msra.mxu1 %v979_v26  ;;  %874 = vmatprep.subr.bf16.mxu0 %v980_v27  ;;  %v861_v46 = vld [vmem:[%s1140_s2] ss:$0 sm:$0xff] }
  0x2c   :  { %896 = vmatprep.subr.bf16.mxu1 %v981_v28 }
  0x2e   :  { %875 = vmatpush3.bf16.msra.mxu0 %v982_v31 }
  0x2f   :  { %897 = vmatpush3.bf16.msra.mxu1 %v983_v32  ;;  %876 = vmatprep.subr.bf16.mxu0 %v984_v33 }
  0x30   :  { %898 = vmatprep.subr.bf16.mxu1 %v985_v34 }
  0x32   :  { %877 = vmatpush3.bf16.msra.mxu0 %v986_v36 }
  0x33   :  { %899 = vmatpush3.bf16.msra.mxu1 %v987_v37  ;;  %906 = vmatprep.subr.bf16.mxu0 %v989_v41 }
  0x34   :  { %928 = vmatprep.subr.bf16.mxu1 %v990_v42  ;;  %v35_v42 = vld [vmem:[#allocation2] sm:$0x3] }
  0x35   :  { %640 = vmatmul.mubr.bf16.vlgmr.msra.gmra.mrb[0].mxu0 %v189_v44 }
  0x36   :  { %907 = vmatpush3.bf16.msra.mxu0 %v991_v47  ;;  %680 = vmatmul.mubr.bf16.vlgmr.msra.gmra.mrb[0].mxu1 %v211_v49 }
  0x37   :  { %908 = vmatprep.subr.bf16.mxu0 %v993_v50  ;;  %929 = vmatpush3.bf16.msra.mxu1 %v992_v52 }
  0x38   :  { %719 = vmatprep.mubr.bf16.mxu0 %v210_v53  ;;  %930 = vmatprep.subr.bf16.mxu1 %v994_v54 }
  0x39   :  { %759 = vmatprep.mubr.bf16.mxu1 %v214_v56 }
  0x3a   :  { %909 = vmatpush3.bf16.msra.mxu0 %v995_v55 }
  0x3b   :  { %910 = vmatprep.subr.bf16.mxu0 %v997_v57  ;;  %931 = vmatpush3.bf16.msra.mxu1 %v996_v58 }
  0x3c   :  { %932 = vmatprep.subr.bf16.mxu1 %v998_v59 }
  0x3e   :  { %911 = vmatpush3.bf16.msra.mxu0 %v999_v60 }
  0x3f   :  { %912 = vmatprep.subr.bf16.mxu0 %v1001_v61  ;;  %933 = vmatpush3.bf16.msra.mxu1 %v1000_v62 }
  0x40   :  { %934 = vmatprep.subr.bf16.mxu1 %v1002_v63 }
  0x42   :  { %913 = vmatpush3.bf16.msra.mxu0 %v1003_v0 }
  0x43   :  { %914 = vmatprep.subr.bf16.mxu0 %v1005_v1  ;;  %935 = vmatpush3.bf16.msra.mxu1 %v1004_v2 }
  0x44   :  { %936 = vmatprep.subr.bf16.mxu1 %v1006_v3 }
  0x46   :  { %915 = vmatpush3.bf16.msra.mxu0 %v1007_v4 }
  0x47   :  { %916 = vmatprep.subr.bf16.mxu0 %v1009_v5  ;;  %937 = vmatpush3.bf16.msra.mxu1 %v1008_v6 }
  0x48   :  { %938 = vmatprep.subr.bf16.mxu1 %v1010_v7 }
  0x4a   :  { %917 = vmatpush3.bf16.msra.mxu0 %v1011_v8 }
  0x4b   :  { %918 = vmatprep.subr.bf16.mxu0 %v1013_v9  ;;  %939 = vmatpush3.bf16.msra.mxu1 %v1012_v10 }
  0x4c   :  { %940 = vmatprep.subr.bf16.mxu1 %v1014_v11 }
  0x4e   :  { %919 = vmatpush3.bf16.msra.mxu0 %v1015_v12 }
  0x4f   :  { %920 = vmatprep.subr.bf16.mxu0 %v1017_v13  ;;  %941 = vmatpush3.bf16.msra.mxu1 %v1016_v14 }
  0x50   :  { %942 = vmatprep.subr.bf16.mxu1 %v1018_v15 }
  0x52   :  { %921 = vmatpush3.bf16.msra.mxu0 %v1019_v16 }
  0x53   :  { %943 = vmatpush3.bf16.msra.mxu1 %v1020_v18 }
  0x55   :  { %720 = vmatmul.mubr.bf16.vlgmr.msra.gmra.mrb[4].mxu0 %v196_v17 }
  0x56   :  { %760 = vmatmul.mubr.bf16.vlgmr.msra.gmra.mrb[4].mxu1 %v212_v19 }
 0x108   :  { %v878_v21 = vpop.f32.mrb[0].mxu0 }
 0x109   :  { %v879_v22 = vpop.f32.mrb[1].mxu0  ;;  %v900_v23 = vpop.f32.mrb[0].mxu1 }
 0x10a   :  { %v880_v24 = vadd.f32 %v879_v22, %v878_v21  ;;  %v881_v25 = vpop.f32.mrb[2].mxu0  ;;  %v901_v26 = vpop.f32.mrb[1].mxu1 }
 0x10b   :  { %v882_v27 = vpop.f32.mrb[3].mxu0  ;;  %v902_v28 = vadd.f32 %v901_v26, %v900_v23  ;;  %v903_v29 = vpop.f32.mrb[2].mxu1 }
 0x10c   :  { %v904_v30 = vpop.f32.mrb[3].mxu1 }
 0x10d   :  { %v682_v31 = vadd.f32 %v902_v28, %v880_v24 }
 0x128   :  { %v922_v32 = vpop.f32.mrb[4].mxu0 }
 0x129   :  { %v923_v33 = vpop.f32.mrb[5].mxu0  ;;  %v944_v34 = vpop.f32.mrb[4].mxu1 }
 0x12a   :  { %v924_v35 = vadd.f32 %v923_v33, %v922_v32  ;;  %v925_v36 = vpop.f32.mrb[6].mxu0  ;;  %v945_v37 = vpop.f32.mrb[5].mxu1 }
 0x12b   :  { %v926_v38 = vpop.f32.mrb[7].mxu0  ;;  %v946_v40 = vadd.f32 %v945_v37, %v944_v34  ;;  %v947_v41 = vpop.f32.mrb[6].mxu1 }
 0x12c   :  { %v722_v39 = vadd.f32 %v924_v35, %v682_v31  ;;  %v948_v43 = vpop.f32.mrb[7].mxu1 }
 0x12e   :  { %v762_v44 = vadd.f32 %v946_v40, %v722_v39 }
 0x130   :  { %v767_v45 = vadd.f32 %v762_v44, %v35_v42 }
 0x132   :  { %768 = vst [vmem:[#allocation2] sm:$0x3] %v767_v45 }
 0x139   :  { %v772_v47 = vld [vmem:[#allocation2] sm:$0x3] }
 0x13a   :  { %v780_v48 = vadd.f32 %v861_v46, %v772_v47 }
 0x13c   :  { %781 = vst [vmem:[#allocation6] sm:$0x3] %v780_v48 }
 0x13d   :  { %1054 = shalt.err (!%p1051_p12)
}
 0x13e   :  { %s1055_s6 = scalar_lea.hbm %s1141_s3, 32 }
 0x13f   :  { %p1056_p13 = scmp.ne.s32.totalorder %s1141_s3, %s1055_s6  ;;  %p1059_p0 = scmp.lt.u32.totalorder %s1055_s6, %s1141_s3 }
 0x141   :  { %p1061_p1 = pnand %p1059_p0, %p1056_p13 }
 0x143   :  { %1064 = shalt.err (!%p1061_p1)
}
 0x144   :  { %791 = dma.vmem_to_hbm [thread:$0]  %s789_s29, 32, %s1141_s3, [#allocation5]  }
 0x145   :  { %1067 = dma.done.wait [#allocation5], 32  }
 0x146   :  { %1068 = vsyncadd [#allocation5], 4294967264 }
 0x147   :  { %795 = vsyncpa [#allocation4], 1 }
 0x148   :  { %796 = vsyncpa [#allocation5], 1 }

</bundles_post_ra>
